<compile_context>
chip_gen: v7x
topology: tpu7x:2x2x1
jax: 0.10.0
libtpu: 0.0.40
codegen_flags: <defaults>
</compile_context>

<pallas_src>
import functools

import jax
import jax.numpy as jnp
from jax import lax
from jax.experimental import pallas as pl
from jax.experimental.pallas import tpu as pltpu


def _round_up(x, m):
    return ((x + m - 1) // m) * m


def _vmem_capacity_bytes():
    """Physical VMEM per core, with a conservative fallback (v7x = 64 MiB)."""
    try:
        info = pltpu.get_tpu_info()
        cap = getattr(info, "vmem_capacity_bytes", None)
        if cap:
            return int(cap)
    except Exception:
        pass
    return 64 << 20


# ---------------------------------------------------------------------------
# Fused single-pass kernel: whole feature slab resident in VMEM per block.
# ---------------------------------------------------------------------------
def _fused_kernel(x_ref, w_ref, b_ref, o_ref, *, f_valid, f_pad, eps):
    x = x_ref[...].astype(jnp.float32)
    inv_n = 1.0 / float(f_valid)
    # Padded tail columns are zero, so the plain sum equals the valid-only sum.
    mean = jnp.sum(x, axis=-1, keepdims=True) * inv_n
    d = x - mean
    if f_pad != f_valid:  # static branch: only mask when padding exists
        col = lax.broadcasted_iota(jnp.int32, d.shape, 1)
        d = jnp.where(col < f_valid, d, 0.0)
    var = jnp.sum(d * d, axis=-1, keepdims=True) * inv_n
    rstd = lax.rsqrt(var + eps)
    w = w_ref[...].astype(jnp.float32)
    b = b_ref[...].astype(jnp.float32)
    o_ref[...] = (d * rstd * w + b).astype(o_ref.dtype)


# ---------------------------------------------------------------------------
# Chunked two-pass fallback (only for feature slabs too large for VMEM).
# ---------------------------------------------------------------------------
def _stats_kernel(x_ref, stats_ref, sum_ref, sq_ref, *, f_valid, eps):
    """Pass 1: accumulate per-row sum / sum-of-squares over chunked features."""
    k = pl.program_id(1)

    @pl.when(k == 0)
    def _init():
        sum_ref[...] = jnp.zeros_like(sum_ref)
        sq_ref[...] = jnp.zeros_like(sq_ref)

    x = x_ref[...].astype(jnp.float32)
    # Padded tail columns are zero (wrapper zero-pads), so no mask is needed.
    sum_ref[...] = sum_ref[...] + jnp.sum(x, axis=-1, keepdims=True)
    sq_ref[...] = sq_ref[...] + jnp.sum(x * x, axis=-1, keepdims=True)

    @pl.when(k == pl.num_programs(1) - 1)
    def _finalize():
        inv_n = 1.0 / float(f_valid)
        mean = sum_ref[...] * inv_n
        # TODO(synk): E[x^2]-mean^2 can lose precision for large-mean inputs;
        # acceptable here since this path only runs for huge feature slabs.
        var = jnp.maximum(sq_ref[...] * inv_n - mean * mean, 0.0)
        rstd = lax.rsqrt(var + eps)
        stats_ref[:, 0:1] = mean
        stats_ref[:, 1:2] = rstd


def _apply_kernel(stats_ref, x_ref, w_ref, b_ref, o_ref):
    """Pass 2: normalize each chunk and apply the (gathered) affine params."""
    x = x_ref[...].astype(jnp.float32)
    mean = stats_ref[:, 0:1]
    rstd = stats_ref[:, 1:2]
    y = (x - mean) * rstd
    o_ref[...] = (y * w_ref[...].astype(jnp.float32)
                  + b_ref[...].astype(jnp.float32)).astype(o_ref.dtype)


def layer_norm_pallas(x, weight, bias, idx, eps=1e-5, chunk_lanes=None,
                      force_two_pass=False):
    """x: (B, C, N, T); weight/bias: (C, N_total, T); idx: (N,) int32."""
    B, C, N, T = x.shape
    F = C * N * T

    # Node gather of the affine params (weight[:, idx, :]); keep native dtype
    # in HBM, upcast to fp32 inside the kernels.
    w_g = jnp.take(weight, idx, axis=1).reshape(1, F)
    b_g = jnp.take(bias, idx, axis=1).reshape(1, F)

    # ---- batch blocking (sublanes) --------------------------------------
    bb = B if B <= 8 else 8                      # batch rows per block
    B_pad = _round_up(B, bb)
    nb = B_pad // bb

    # ---- generation-aware VMEM budget ------------------------------------
    vmem_cap = _vmem_capacity_bytes()
    vmem_budget = (vmem_cap * 3) // 4            # ~48 MiB v7x, ~96 MiB v5e/v6e

    in_item = jnp.dtype(x.dtype).itemsize
    w_item = jnp.dtype(w_g.dtype).itemsize

    # ---- fused single-pass path (x read from HBM exactly once) ----------
    F_pad_fused = _round_up(F, 128)
    fused_bytes = (bb * F_pad_fused * (4 * in_item + 3 * 4)   # x/out dbl-buf + fp32 temps
                   + 4 * F_pad_fused * w_item)                # w, b dbl-buffered
    use_fused = (not force_two_pass) and fused_bytes <= vmem_budget

    if use_fused:
        F_pad = F_pad_fused
        x2 = jnp.pad(x.reshape(B, F), ((0, B_pad - B), (0, F_pad - F)))
        w2 = jnp.pad(w_g, ((0, 0), (0, F_pad - F)))
        b2 = jnp.pad(b_g, ((0, 0), (0, F_pad - F)))

        out2 = pl.pallas_call(
            functools.partial(_fused_kernel, f_valid=F, f_pad=F_pad,
                              eps=float(eps)),
            out_shape=jax.ShapeDtypeStruct((B_pad, F_pad), x.dtype),
            grid=(nb,),
            in_specs=[
                pl.BlockSpec((bb, F_pad), lambda i: (i, 0)),   # x slab
                pl.BlockSpec((1, F_pad), lambda i: (0, 0)),    # weight
                pl.BlockSpec((1, F_pad), lambda i: (0, 0)),    # bias
            ],
            out_specs=pl.BlockSpec((bb, F_pad), lambda i: (i, 0)),
            compiler_params=pltpu.CompilerParams(
                dimension_semantics=("parallel",),
                vmem_limit_bytes=int(vmem_budget)),
        )(x2, w2, b2)
        return out2[:B, :F].reshape(B, C, N, T)

    # ---- chunked two-pass fallback (huge F) ------------------------------
    if chunk_lanes is None:
        # ~6 MiB of fp32 x per block: per-step grid overhead stays <10% of DMA.
        chunk_lanes = max(512, _round_up((6 << 20) // (bb * 4), 128))
    nc = max(1, pl.cdiv(F, chunk_lanes))
    cf = _round_up(pl.cdiv(F, nc), 128)          # lanes per chunk, mult. of 128
    F_pad = cf * nc

    x2 = jnp.pad(x.reshape(B, F), ((0, B_pad - B), (0, F_pad - F)))
    w2 = jnp.pad(w_g, ((0, 0), (0, F_pad - F)))
    b2 = jnp.pad(b_g, ((0, 0), (0, F_pad - F)))

    # Pass 1: per-batch mean / rstd via chunked accumulation.
    stats = pl.pallas_call(
        functools.partial(_stats_kernel, f_valid=F, eps=float(eps)),
        out_shape=jax.ShapeDtypeStruct((B_pad, 2), jnp.float32),
        grid=(nb, nc),
        in_specs=[pl.BlockSpec((bb, cf), lambda i, k: (i, k))],
        out_specs=pl.BlockSpec((bb, 2), lambda i, k: (i, 0)),
        scratch_shapes=[pltpu.VMEM((bb, 1), jnp.float32),
                        pltpu.VMEM((bb, 1), jnp.float32)],
        compiler_params=pltpu.CompilerParams(
            dimension_semantics=("parallel", "arbitrary"),
            vmem_limit_bytes=int(vmem_budget)),
    )(x2)

    # Pass 2: normalize + affine (fully parallel).
    out2 = pl.pallas_call(
        _apply_kernel,
        out_shape=jax.ShapeDtypeStruct((B_pad, F_pad), x.dtype),
        grid=(nb, nc),
        in_specs=[
            pl.BlockSpec((bb, 2), lambda i, k: (i, 0)),    # stats (resident)
            pl.BlockSpec((bb, cf), lambda i, k: (i, k)),   # x chunk
            pl.BlockSpec((1, cf), lambda i, k: (0, k)),    # weight chunk
            pl.BlockSpec((1, cf), lambda i, k: (0, k)),    # bias chunk
        ],
        out_specs=pl.BlockSpec((bb, cf), lambda i, k: (i, k)),
        compiler_params=pltpu.CompilerParams(
            dimension_semantics=("parallel", "parallel"),
            vmem_limit_bytes=int(vmem_budget)),
    )(stats, x2, w2, b2)

    return out2[:B, :F].reshape(B, C, N, T)


def layer_norm_ref(x, weight, bias, idx, eps=1e-5):
    """Pure-JAX reference for F.layer_norm(input, input.shape[1:], w[:,idx,:], b[:,idx,:])."""
    w_g = jnp.take(weight, idx, axis=1).astype(jnp.float32)
    b_g = jnp.take(bias, idx, axis=1).astype(jnp.float32)
    xf = x.astype(jnp.float32)
    mean = jnp.mean(xf, axis=(1, 2, 3), keepdims=True)
    var = jnp.mean((xf - mean) ** 2, axis=(1, 2, 3), keepdims=True)
    y = (xf - mean) * lax.rsqrt(var + eps)
    return (y * w_g[None] + b_g[None]).astype(x.dtype)


if __name__ == "__main__":
    key = jax.random.PRNGKey(0)

    def run_case(B, C, N_total, N, T, case_key, chunk_lanes=None,
                 force_two_pass=False):
        k_x, k_w, k_b, k_idx = jax.random.split(case_key, 4)
        x = jax.random.normal(k_x, (B, C, N, T), dtype=jnp.float32)
        weight = 1.0 + 0.1 * jax.random.normal(k_w, (C, N_total, T), dtype=jnp.float32)
        bias = 0.1 * jax.random.normal(k_b, (C, N_total, T), dtype=jnp.float32)
        idx = jax.random.permutation(k_idx, N_total)[:N].astype(jnp.int32)

        out = layer_norm_pallas(x, weight, bias, idx, eps=1e-5,
                                chunk_lanes=chunk_lanes,
                                force_two_pass=force_two_pass)
        out = jax.block_until_ready(out)
        ref = layer_norm_ref(x, weight, bias, idx, eps=1e-5)
        assert out.shape == (B, C, N, T)
        assert jnp.allclose(out, ref, atol=1e-4, rtol=1e-4), (
            f"mismatch vs reference for case B={B} C={C} N={N} T={T} "
            f"chunk_lanes={chunk_lanes} force_two_pass={force_two_pass}")

    keys = jax.random.split(key, 4)
    # Main case (lane-dense, fused single pass): F = 4*8*16 = 512.
    run_case(2, 4, 10, 8, 16, keys[0])
    # Same shapes, forced onto the chunked two-pass fallback (4 feature chunks).
    run_case(2, 4, 10, 8, 16, keys[1], chunk_lanes=128, force_two_pass=True)
    # F = 3*5*7 = 105 -> padded to 128 (exercises the static padding-mask path).
    run_case(3, 3, 7, 5, 7, keys[2])
    # B = 9 -> bb = 8, B_pad = 16, nb = 2 (exercises batch padding + parallel axis).
    run_case(9, 2, 6, 4, 16, keys[3])

    print("KERNEL_OK")
</pallas_src>

<mosaic_0001>
module attributes {stable_mosaic.version = 11 : i64} {
  func.func @_fused_kernel(%arg0: i32, %arg1: memref<2x512xf32, #tpu.memory_space<vmem>>, %arg2: memref<1x512xf32, #tpu.memory_space<vmem>>, %arg3: memref<1x512xf32, #tpu.memory_space<vmem>>, %arg4: memref<2x512xf32, #tpu.memory_space<vmem>>) attributes {dimension_semantics = [#tpu.dimension_semantics<parallel>], iteration_bounds = array<i64: 1>, scalar_prefetch = 0 : i64, scratch_operands = 0 : i64, tpu.core_type = #tpu.core_type<tc>, window_params = [{transform_indices = @transform_0, window_bounds = array<i64: 2, 512>}, {pipeline_mode = #tpu.pipeline_mode<synchronous>, transform_indices = @transform_1, window_bounds = array<i64: 1, 512>}, {pipeline_mode = #tpu.pipeline_mode<synchronous>, transform_indices = @transform_2, window_bounds = array<i64: 1, 512>}, {transform_indices = @transform_3, window_bounds = array<i64: 2, 512>}]} {
    %c0 = arith.constant 0 : index
    %c0_0 = arith.constant 0 : index
    %0 = vector.load %arg1[%c0, %c0_0] : memref<2x512xf32, #tpu.memory_space<vmem>>, vector<2x512xf32>
    %cst = arith.constant dense<0.000000e+00> : vector<2xf32>
    %1 = vector.multi_reduction <add>, %0, %cst [1] : vector<2x512xf32> to vector<2xf32>
    %2 = vector.shape_cast %1 : vector<2xf32> to vector<2x1xf32>
    %cst_1 = arith.constant 0.001953125 : f32
    %3 = vector.broadcast %cst_1 : f32 to vector<2x1xf32>
    %4 = arith.mulf %2, %3 : vector<2x1xf32>
    %5 = vector.broadcast %4 : vector<2x1xf32> to vector<2x512xf32>
    %6 = arith.subf %0, %5 : vector<2x512xf32>
    %7 = arith.mulf %6, %6 : vector<2x512xf32>
    %cst_2 = arith.constant dense<0.000000e+00> : vector<2xf32>
    %8 = vector.multi_reduction <add>, %7, %cst_2 [1] : vector<2x512xf32> to vector<2xf32>
    %9 = vector.shape_cast %8 : vector<2xf32> to vector<2x1xf32>
    %cst_3 = arith.constant 0.001953125 : f32
    %10 = vector.broadcast %cst_3 : f32 to vector<2x1xf32>
    %11 = arith.mulf %9, %10 : vector<2x1xf32>
    %cst_4 = arith.constant 9.99999974E-6 : f32
    %12 = vector.broadcast %cst_4 : f32 to vector<2x1xf32>
    %13 = arith.addf %11, %12 : vector<2x1xf32>
    %14 = math.rsqrt %13 : vector<2x1xf32>
    %c0_5 = arith.constant 0 : index
    %c0_6 = arith.constant 0 : index
    %15 = vector.load %arg2[%c0_5, %c0_6] : memref<1x512xf32, #tpu.memory_space<vmem>>, vector<1x512xf32>
    %c0_7 = arith.constant 0 : index
    %c0_8 = arith.constant 0 : index
    %16 = vector.load %arg3[%c0_7, %c0_8] : memref<1x512xf32, #tpu.memory_space<vmem>>, vector<1x512xf32>
    %17 = vector.broadcast %14 : vector<2x1xf32> to vector<2x512xf32>
    %18 = arith.mulf %6, %17 : vector<2x512xf32>
    %19 = vector.broadcast %15 : vector<1x512xf32> to vector<2x512xf32>
    %20 = arith.mulf %18, %19 : vector<2x512xf32>
    %21 = vector.broadcast %16 : vector<1x512xf32> to vector<2x512xf32>
    %22 = arith.addf %20, %21 : vector<2x512xf32>
    %c0_9 = arith.constant 0 : index
    %c0_10 = arith.constant 0 : index
    %23 = vector.load %arg4[%c0_9, %c0_10] : memref<2x512xf32, #tpu.memory_space<vmem>>, vector<2x512xf32>
    tpu.vector_store %arg4[%c0_9, %c0_10], %22 {strides = array<i32>} : memref<2x512xf32, #tpu.memory_space<vmem>>, vector<2x512xf32>,
    return
  }
  func.func @transform_0(%arg0: i32) -> (i32, i32) {
    %c0_i32 = arith.constant 0 : i32
    %c0_i32_0 = arith.constant 0 : i32
    return %arg0, %c0_i32 : i32, i32
  }
  func.func @transform_1(%arg0: i32) -> (i32, i32) {
    %c0_i32 = arith.constant 0 : i32
    %c0_i32_0 = arith.constant 0 : i32
    %c0_i32_1 = arith.constant 0 : i32
    return %c0_i32, %c0_i32_0 : i32, i32
  }
  func.func @transform_2(%arg0: i32) -> (i32, i32) {
    %c0_i32 = arith.constant 0 : i32
    %c0_i32_0 = arith.constant 0 : i32
    %c0_i32_1 = arith.constant 0 : i32
    return %c0_i32, %c0_i32_0 : i32, i32
  }
  func.func @transform_3(%arg0: i32) -> (i32, i32) {
    %c0_i32 = arith.constant 0 : i32
    %c0_i32_0 = arith.constant 0 : i32
    return %arg0, %c0_i32 : i32, i32
  }
}

</mosaic_0001>

<bundles_post_ra>
// kernel: tpu_custom_call.1
= control target key start
LH: loop header
LB: loop body
LE: loop exit
PB: predicated region body
PF: predicated region fallthrough
CT: control target
= control target key end

     0   :  { %8 = vsyncpa [#allocation3], 0  ;;  %s381_s0 = inlined_call_operand.hbm [shape: f32[2,512], index: 0, kind: input, shape index: {}]   ;;  %s382_s1 = inlined_call_operand.hbm [shape: f32[1,512], index: 1, kind: input, shape index: {}]   ;;  %s383_s2 = inlined_call_operand.vmem [shape: f32[1,512], index: 2, kind: input, shape index: {}]   ;;  %s384_s3 = inlined_call_operand.hbm [shape: f32[2,512], index: 3, kind: output, shape index: {}]  }
   0x1   :  { %9 = vsyncpa [#allocation6], 0 }
   0x2   :  { %10 = vsyncpa [#allocation4], 0  ;;  %s299_s12 = smov [#allocation2]   ;;  %s300_s14 = smov [#allocation5]  }
   0x3   :  { %s17_s13 = sshll.u32 %s299_s12, 4  ;;  %s27_s15 = sshll.u32 %s300_s14, 4  ;;  %s18_s13 = int_to_ptr.vmem [resolvable:$true] %s17_s13  ;;  %s28_s15 = int_to_ptr.vmem [resolvable:$true] %s27_s15 }
   0x4   :  { %s227_s18 = scalar_lea.hbm %s381_s0, 128 }
   0x5   :  { %p228_p0 = scmp.ne.s32.totalorder %s381_s0, %s227_s18  ;;  %p231_p1 = scmp.lt.u32.totalorder %s227_s18, %s381_s0 }
   0x7   :  { %p233_p2 = pnand %p231_p1, %p228_p0 }
   0x9   :  { %236 = shalt.err (!%p233_p2)
}
   0xa   :  { %s237_s23 = scalar_lea.vmem %s18_s13, 128  ;;  %p242_p4 = scmp.lt.s32.totalorder %s18_s13, %s18_s13 }
   0xb   :  { %p238_p3 = scmp.ne.s32.totalorder %s18_s13, %s237_s23  ;;  %p243_p5 = scmp.lt.s32.totalorder %s237_s23, %s237_s23 }
   0xd   :  { %p244_p6 = por %p243_p5, %p242_p4 }
   0xf   :  { %p245_p7 = pnand %p244_p6, %p238_p3 }
  0x11   :  { %248 = shalt.err (!%p245_p7)
}
  0x12   :  { %20 = dma.hbm_to_vmem [thread:$0]  %s381_s0, 128, %s18_s13, [#allocation3]  }
  0x13   :  { %s249_s28 = scalar_lea.hbm %s382_s1, 64 }
  0x14   :  { %p250_p8 = scmp.ne.s32.totalorder %s382_s1, %s249_s28  ;;  %p253_p9 = scmp.lt.u32.totalorder %s249_s28, %s382_s1 }
  0x16   :  { %p255_p10 = pnand %p253_p9, %p250_p8 }
  0x18   :  { %258 = shalt.err (!%p255_p10)
}
  0x19   :  { %s259_s6 = scalar_lea.vmem %s28_s15, 64  ;;  %p264_p12 = scmp.lt.s32.totalorder %s28_s15, %s28_s15 }
  0x1a   :  { %p260_p11 = scmp.ne.s32.totalorder %s28_s15, %s259_s6  ;;  %p265_p13 = scmp.lt.s32.totalorder %s259_s6, %s259_s6 }
  0x1c   :  { %p266_p0 = por %p265_p13, %p264_p12 }
  0x1e   :  { %p267_p1 = pnand %p266_p0, %p260_p11 }
  0x20   :  { %270 = shalt.err (!%p267_p1)
}
  0x21   :  { %30 = dma.hbm_to_vmem [thread:$0]  %s382_s1, 64, %s28_s15, [#allocation6]  }
  0x22   :  { %293 = dma.done.wait [#allocation3], 128  }
  0x23   :  { %294 = vsyncadd [#allocation3], 4294967168 }
  0x24   :  { %295 = dma.done.wait [#allocation6], 64  }
  0x25   :  { %296 = vsyncadd [#allocation6], 4294967232  ;;  %v45_v0 = vlaneseq  ;;  %v301_v1 = vmov 1983009808   ;;  %v39_v6 = vld [vmem:[#allocation2] sm:$0xff]  ;;  %vm62_vm0 = vcmask 1041408  }
  0x26   :  { %v43_v2 = vunpack.c.l.s4 %v301_v1  ;;  %v41_v7 = vcombine.high %v39_v6, %v39_v6  ;;  %v302_v19 = vmov 269488144   ;;  %v118_v46 = vld [vmem:[#allocation5] sm:$0xf]  ;;  %v119_v48 = vld [vmem:[%s383_s2] sm:$0xf] }
  0x27   :  { %v46_v3 = vshrl.u32 %v45_v0, 7  ;;  %v75_v20 = vunpack.c.l.s4 %v302_v19  ;;  %s303_s2 = smov [#allocation7]  }
  0x28   :  { %v44_v4 = vunpack.c.0.s8 %v43_v2  ;;  %s209_s9 = sshll.u32 %s303_s2, 4  ;;  %s210_s9 = int_to_ptr.vmem [resolvable:$true] %s209_s9 }
  0x29   :  { %v76_v21 = vunpack.c.0.s8 %v75_v20  ;;  %v133_v41 = vsub.s32 0, %v46_v3  ;;  %v137_v42 = vsub.s32 1, %v46_v3  ;;  %v141_v43 = vsub.s32 2, %v46_v3  ;;  %s271_s10 = scalar_lea.vmem %s210_s9, 128  ;;  %p276_p3 = scmp.lt.s32.totalorder %s210_s9, %s210_s9 }
  0x2a   :  { %v348_v5 = vsub.s32 %v44_v4, %v46_v3  ;;  %v145_v44 = vsub.s32 3, %v46_v3  ;;  %p272_p2 = scmp.ne.s32.totalorder %s210_s9, %s271_s10  ;;  %p277_p4 = scmp.lt.s32.totalorder %s271_s10, %s271_s10 }
  0x2b   :  { %v79_v22 = vsub.s32 %v76_v21, %v46_v3  ;;  %v134_v49 = vrot.slane %v118_v46, %v133_v41  ;;  %v138_v50 = vrot.slane %v118_v46, %v137_v42  ;;  %v142_v51 = vrot.slane %v118_v46, %v141_v43 }
  0x2c   :  { %v48_v8 = vrot.slane %v39_v6, %v348_v5  ;;  %v55_v9 = vrot.slane %v41_v7, %v348_v5  ;;  %v146_v52 = vrot.slane %v118_v46, %v145_v44  ;;  %v170_v53 = vrot.slane %v119_v48, %v133_v41  ;;  %p278_p5 = por %p277_p4, %p276_p3 }
  0x2d   :  { %v174_v54 = vrot.slane %v119_v48, %v137_v42  ;;  %v178_v55 = vrot.slane %v119_v48, %v141_v43  ;;  %v182_v56 = vrot.slane %v119_v48, %v145_v44  ;;  %v147_v57 = vcombine.low %v134_v49, %v138_v50 }
  0x2e   :  { %v56_v10 = vcombine.high %v48_v8, %v48_v8  ;;  %v63_v11 = vsel %vm62_vm0, %v48_v8, 0.0  ;;  %v57_v12 = vcombine.high %v55_v9, %v55_v9  ;;  %v66_v14 = vsel %vm62_vm0, %v55_v9, 0.0  ;;  %p279_p6 = pnand %p278_p5, %p272_p2 }
  0x2f   :  { %v148_v58 = vcombine.low %v142_v51, %v146_v52  ;;  %v183_v59 = vcombine.low %v170_v53, %v174_v54  ;;  %v184_v60 = vcombine.low %v178_v55, %v182_v56  ;;  %v155_v61 = vrot.slane %v147_v57, %v348_v5 }
  0x30   :  { %v64_v13 = vsel %vm62_vm0, %v56_v10, 0.0  ;;  %v68_v16 = vsel %vm62_vm0, %v57_v12, 0.0 }
  0x31   :  { %v65_v15 = vadd.f32 %v64_v13, %v63_v11  ;;  %v162_v62 = vrot.slane %v148_v58, %v348_v5  ;;  %v191_v63 = vrot.slane %v183_v59, %v348_v5  ;;  %v198_v0 = vrot.slane %v184_v60, %v348_v5 }
  0x33   :  { %v67_v17 = vadd.f32 %v66_v14, %v65_v15  ;;  %v163_v3 = vcombine.low %v155_v61, %v162_v62 }
  0x35   :  { %v69_v18 = vadd.f32 %v68_v16, %v67_v17 }
  0x37   :  { %70 = vadd.xlane.f32.xlu0 %v69_v18 }
  0xc4   :  { %v71_v23 = vpop.xlane.xlu0 %70 }
  0xc5   :  { %v72_v24 = vmul.f32 0.001953125, %v71_v23 }
  0xc7   :  { %v80_v25 = vrot.slane %v72_v24, %v79_v22 }
  0xc9   :  { %v82_v26 = vsub.f32 %v39_v6, %v80_v25  ;;  %v199_v6 = vcombine.low %v191_v63, %v198_v0 }
  0xcb   :  { %v83_v27 = vmul.f32 %v82_v26, %v82_v26 }
  0xcd   :  { %v85_v28 = vcombine.high %v83_v27, %v83_v27  ;;  %v92_v29 = vrot.slane %v83_v27, %v348_v5 }
  0xcf   :  { %v99_v30 = vrot.slane %v85_v28, %v348_v5  ;;  %v100_v31 = vcombine.high %v92_v29, %v92_v29  ;;  %v106_v33 = vsel %vm62_vm0, %v92_v29, 0.0 }
  0xd1   :  { %v101_v32 = vcombine.high %v99_v30, %v99_v30  ;;  %v107_v34 = vsel %vm62_vm0, %v100_v31, 0.0  ;;  %v109_v36 = vsel %vm62_vm0, %v99_v30, 0.0 }
  0xd2   :  { %v108_v35 = vadd.f32 %v107_v34, %v106_v33 }
  0xd3   :  { %v111_v38 = vsel %vm62_vm0, %v101_v32, 0.0 }
  0xd4   :  { %v110_v37 = vadd.f32 %v109_v36, %v108_v35 }
  0xd6   :  { %v112_v39 = vadd.f32 %v111_v38, %v110_v37 }
  0xd8   :  { %113 = vadd.xlane.f32.xlu0 %v112_v39 }
 0x165   :  { %v114_v40 = vpop.xlane.xlu0 %113 }
 0x166   :  { %v115_v45 = vmul.f32 0.001953125, %v114_v40 }
 0x168   :  { %v116_v47 = vadd.f32 1e-05, %v115_v45 }
 0x16a   :  { %225 = vrsqrt.f32 %v116_v47 }
 0x174   :  { %v226_v1 = vpop.eup %225 }
 0x175   :  { %v127_v2 = vrot.slane %v226_v1, %v79_v22 }
 0x177   :  { %v129_v4 = vmul.f32 %v127_v2, %v82_v26 }
 0x179   :  { %v165_v7 = vmul.f32 %v163_v3, %v129_v4 }
 0x17b   :  { %v201_v8 = vadd.f32 %v199_v6, %v165_v7 }
 0x17d   :  { %202 = vst [vmem:[#allocation7] sm:$0xff] %v201_v8 }
 0x17e   :  { %282 = shalt.err (!%p279_p6)
}
 0x17f   :  { %s283_s13 = scalar_lea.hbm %s384_s3, 128 }
 0x180   :  { %p284_p7 = scmp.ne.s32.totalorder %s384_s3, %s283_s13  ;;  %p287_p8 = scmp.lt.u32.totalorder %s283_s13, %s384_s3 }
 0x182   :  { %p289_p9 = pnand %p287_p8, %p284_p7 }
 0x184   :  { %292 = shalt.err (!%p289_p9)
}
 0x185   :  { %212 = dma.vmem_to_hbm [thread:$0]  %s210_s9, 128, %s384_s3, [#allocation4]  }
 0x186   :  { %297 = dma.done.wait [#allocation4], 128  }
 0x187   :  { %298 = vsyncadd [#allocation4], 4294967168 }
 0x188   :  { %216 = vsyncpa [#allocation3], 1 }
 0x189   :  { %217 = vsyncpa [#allocation6], 1 }
 0x18a   :  { %218 = vsyncpa [#allocation4], 1 }

</bundles_post_ra>
